<compile_context>
chip_gen: v7x
topology: tpu7x:2x2x1
jax: 0.10.0
libtpu: 0.0.40
codegen_flags: <defaults>
</compile_context>

<pallas_src>
import jax
import jax.numpy as jnp
from jax.experimental import pallas as pl
from jax.experimental.pallas import tpu as pltpu

_LANE = 128  # pad the hidden dim to the 128-lane vreg width


def _round_up(x, m):
    return ((x + m - 1) // m) * m


def _make_critic_kernel(compute_dtype, scalar_out):
    def kernel(x_ref, w1_ref, b1_ref, w2_ref, b2_ref, w3_ref, b3_ref, o_ref):
        # In-kernel cast of the (only) batch-scaling input: f32 HBM -> bf16 matmul operand.
        x = x_ref[...].astype(compute_dtype)
        # f32 MXU accumulation; bias-add + tanh in f32; stage activations in bf16.
        h1 = jnp.tanh(
            jnp.dot(x, w1_ref[...], preferred_element_type=jnp.float32) + b1_ref[...]
        ).astype(compute_dtype)
        h2 = jnp.tanh(
            jnp.dot(h1, w2_ref[...], preferred_element_type=jnp.float32) + b2_ref[...]
        ).astype(compute_dtype)
        if scalar_out:
            # out_dim == 1: VPU elementwise multiply + XLU cross-lane reduce instead of an
            # N=1 MXU pass; writeback stays a single narrow column.
            out = jnp.sum(
                h2.astype(jnp.float32) * w3_ref[...].astype(jnp.float32),
                axis=-1, keepdims=True,
            ) + b3_ref[...]
        else:
            out = jnp.dot(h2, w3_ref[...], preferred_element_type=jnp.float32) + b3_ref[...]
        o_ref[...] = out.astype(o_ref.dtype)

    return kernel


def prepare_critic_params(params, compute_dtype=jnp.bfloat16):
    """One-time weight prep (hoisted out of the hot path): zero-pad hidden 64->128 so the
    activations are lane-dense, cast matmul operands to bf16, keep biases f32.
    Padded bias entries are 0 so tanh(0)=0 flows through zero weight rows -> math exact."""
    input_dim, hidden = params["W1"].shape
    out_dim = params["W3"].shape[1]
    Hp = _round_up(hidden, _LANE)

    W1 = (jnp.zeros((input_dim, Hp), jnp.float32)
          .at[:, :hidden].set(params["W1"]).astype(compute_dtype))
    W2 = (jnp.zeros((Hp, Hp), jnp.float32)
          .at[:hidden, :hidden].set(params["W2"]).astype(compute_dtype))
    b1 = jnp.zeros((1, Hp), jnp.float32).at[0, :hidden].set(params["b1"])
    b2 = jnp.zeros((1, Hp), jnp.float32).at[0, :hidden].set(params["b2"])
    b3 = params["b3"].reshape(1, out_dim).astype(jnp.float32)
    if out_dim == 1:
        # Store the single output column as a lane-dense row for the multiply+reduce path.
        W3 = (jnp.zeros((1, Hp), jnp.float32)
              .at[0, :hidden].set(params["W3"][:, 0]).astype(compute_dtype))
    else:
        W3 = (jnp.zeros((Hp, out_dim), jnp.float32)
              .at[:hidden, :].set(params["W3"]).astype(compute_dtype))

    meta = dict(input_dim=input_dim, hidden=hidden, out_dim=out_dim, Hp=Hp,
                compute_dtype=compute_dtype)
    return {"W1": W1, "b1": b1, "W2": W2, "b2": b2, "W3": W3, "b3": b3, "meta": meta}


def _choose_block_rows(B, block_rows):
    # Aim for >= 2 grid steps for non-trivial B (v7x has 2 TensorCores; "parallel" grid
    # axes shard across them); keep Bt a multiple of 256 when large, multiple of 8 always,
    # and never larger than needed for the actual batch.
    bt = _round_up(pl.cdiv(B, 2), 256)
    bt = min(block_rows, bt, _round_up(B, 8))
    return max(8, _round_up(bt, 8))


def critic_forward(obs, prepped, *, block_rows=4096):
    """obs: (B, input_dim) float32. prepped: output of prepare_critic_params."""
    meta = prepped["meta"]
    input_dim = meta["input_dim"]
    hidden = meta["hidden"]
    out_dim = meta["out_dim"]
    Hp = meta["Hp"]
    compute_dtype = meta["compute_dtype"]
    scalar_out = (out_dim == 1)

    obs = jnp.asarray(obs, jnp.float32)
    B = obs.shape[0]

    Bt = _choose_block_rows(B, block_rows)
    grid = (pl.cdiv(B, Bt),)  # last tile may be partial; output writes are clipped to B

    w_item = jnp.dtype(compute_dtype).itemsize
    cost = pl.CostEstimate(
        flops=2 * B * (input_dim * Hp + Hp * Hp + Hp * out_dim),
        transcendentals=2 * B * hidden,
        bytes_accessed=(B * input_dim * 4                                      # obs (f32)
                        + (input_dim * Hp + Hp * Hp + Hp * out_dim) * w_item   # weights
                        + (2 * Hp + out_dim) * 4                               # biases
                        + B * out_dim * 4),                                    # output
    )

    def resident(shape):
        # Weights / biases: same block every grid step -> stay VMEM-resident.
        return pl.BlockSpec(shape, lambda i: (0, 0))

    w3_shape = (1, Hp) if scalar_out else (Hp, out_dim)

    out = pl.pallas_call(
        _make_critic_kernel(compute_dtype, scalar_out),
        out_shape=jax.ShapeDtypeStruct((B, out_dim), jnp.float32),
        grid=grid,
        in_specs=[
            pl.BlockSpec((Bt, input_dim), lambda i: (i, 0)),  # obs: tiled over batch
            resident((input_dim, Hp)),                        # W1
            resident((1, Hp)),                                # b1
            resident((Hp, Hp)),                               # W2
            resident((1, Hp)),                                # b2
            resident(w3_shape),                               # W3 (row if out_dim==1)
            resident((1, out_dim)),                           # b3
        ],
        out_specs=pl.BlockSpec((Bt, out_dim), lambda i: (i, 0)),
        compiler_params=pltpu.CompilerParams(dimension_semantics=("parallel",)),
        cost_estimate=cost,
    )(obs, prepped["W1"], prepped["b1"], prepped["W2"], prepped["b2"],
      prepped["W3"], prepped["b3"])
    return out


def init_critic_params(key, input_dim, output_dim, hidden=64):
    """Deterministic init mirroring PyTorch nn.Linear default: U(-1/sqrt(fan_in), 1/sqrt(fan_in))."""
    keys = jax.random.split(key, 6)

    def linear(kw, kb, fan_in, fan_out):
        bound = 1.0 / jnp.sqrt(jnp.float32(fan_in))
        W = jax.random.uniform(kw, (fan_in, fan_out), jnp.float32, -bound, bound)
        b = jax.random.uniform(kb, (fan_out,), jnp.float32, -bound, bound)
        return W, b

    W1, b1 = linear(keys[0], keys[1], input_dim, hidden)
    W2, b2 = linear(keys[2], keys[3], hidden, hidden)
    W3, b3 = linear(keys[4], keys[5], hidden, output_dim)
    return {"W1": W1, "b1": b1, "W2": W2, "b2": b2, "W3": W3, "b3": b3}


def _refs(obs, params):
    bf = jnp.bfloat16
    # Reference 1: identical bf16-operand / f32-accumulate math (tight check).
    h1 = jnp.tanh(jnp.dot(obs.astype(bf), params["W1"].astype(bf),
                          preferred_element_type=jnp.float32) + params["b1"])
    h2 = jnp.tanh(jnp.dot(h1.astype(bf), params["W2"].astype(bf),
                          preferred_element_type=jnp.float32) + params["b2"])
    ref_bf16 = jnp.dot(h2.astype(bf), params["W3"].astype(bf),
                       preferred_element_type=jnp.float32) + params["b3"]
    # Reference 2: full f32 math (loose check — bf16 matmul operands inside the kernel).
    h1f = jnp.tanh(obs @ params["W1"] + params["b1"])
    h2f = jnp.tanh(h1f @ params["W2"] + params["b2"])
    ref_f32 = h2f @ params["W3"] + params["b3"]
    return ref_bf16, ref_f32


if __name__ == "__main__":
    key = jax.random.PRNGKey(0)
    k_obs, k_obs2, k_params = jax.random.split(key, 3)

    batch, input_dim, output_dim = 8, 32, 1  # Critic outputs a scalar value per obs
    params = init_critic_params(k_params, input_dim, output_dim)
    prepped = prepare_critic_params(params)  # hoisted weight prep (done once)

    # Small batch (single grid step).
    obs = jax.random.normal(k_obs, (batch, input_dim), dtype=jnp.float32)
    out = jax.block_until_ready(critic_forward(obs, prepped))
    assert out.shape == (batch, output_dim)
    ref_bf16, ref_f32 = _refs(obs, params)
    assert jnp.allclose(out, ref_bf16, atol=2e-3, rtol=2e-3)
    assert jnp.allclose(out, ref_f32, atol=5e-2, rtol=5e-2)

    # Larger batch exercising the 2-step grid + partial (masked) last tile path.
    batch2 = 300
    obs2 = jax.random.normal(k_obs2, (batch2, input_dim), dtype=jnp.float32)
    out2 = jax.block_until_ready(critic_forward(obs2, prepped))
    assert out2.shape == (batch2, output_dim)
    ref2_bf16, ref2_f32 = _refs(obs2, params)
    assert jnp.allclose(out2, ref2_bf16, atol=2e-3, rtol=2e-3)
    assert jnp.allclose(out2, ref2_f32, atol=5e-2, rtol=5e-2)

    print("KERNEL_OK")
</pallas_src>

<mosaic_0001>
module attributes {stable_mosaic.version = 11 : i64} {
  func.func @kernel(%arg0: i32, %arg1: memref<8x32xf32, #tpu.memory_space<vmem>>, %arg2: memref<32x128xbf16, #tpu.memory_space<vmem>>, %arg3: memref<1x128xf32, #tpu.memory_space<vmem>>, %arg4: memref<128x128xbf16, #tpu.memory_space<vmem>>, %arg5: memref<1x128xf32, #tpu.memory_space<vmem>>, %arg6: memref<1x128xbf16, #tpu.memory_space<vmem>>, %arg7: memref<1x1xf32, #tpu.memory_space<vmem>>, %arg8: memref<8x1xf32, #tpu.memory_space<vmem>>) attributes {dimension_semantics = [#tpu.dimension_semantics<parallel>], iteration_bounds = array<i64: 1>, scalar_prefetch = 0 : i64, scratch_operands = 0 : i64, tpu.core_type = #tpu.core_type<tc>, window_params = [{transform_indices = @transform_0, window_bounds = array<i64: 8, 32>}, {pipeline_mode = #tpu.pipeline_mode<synchronous>, transform_indices = @transform_1, window_bounds = array<i64: 32, 128>}, {pipeline_mode = #tpu.pipeline_mode<synchronous>, transform_indices = @transform_2, window_bounds = array<i64: 1, 128>}, {pipeline_mode = #tpu.pipeline_mode<synchronous>, transform_indices = @transform_3, window_bounds = array<i64: 128, 128>}, {pipeline_mode = #tpu.pipeline_mode<synchronous>, transform_indices = @transform_4, window_bounds = array<i64: 1, 128>}, {pipeline_mode = #tpu.pipeline_mode<synchronous>, transform_indices = @transform_5, window_bounds = array<i64: 1, 128>}, {pipeline_mode = #tpu.pipeline_mode<synchronous>, transform_indices = @transform_6, window_bounds = array<i64: 1, 1>}, {transform_indices = @transform_7, window_bounds = array<i64: 8, 1>}]} {
    %c0 = arith.constant 0 : index
    %c0_0 = arith.constant 0 : index
    %0 = vector.load %arg1[%c0, %c0_0] : memref<8x32xf32, #tpu.memory_space<vmem>>, vector<8x32xf32>
    %1 = arith.truncf %0 : vector<8x32xf32> to vector<8x32xbf16>
    %c0_1 = arith.constant 0 : index
    %c0_2 = arith.constant 0 : index
    %2 = vector.load %arg2[%c0_1, %c0_2] : memref<32x128xbf16, #tpu.memory_space<vmem>>, vector<32x128xbf16>
    %cst = arith.constant dense<0.000000e+00> : vector<8x128xf32>
    %3 = tpu.matmul %1, %2, %cst {dimension_numbers = #tpu.dot_dimension_numbers<[1], [0], [0], [1], [0, 0, 1, 1], [], []>} : vector<8x32xbf16>, vector<32x128xbf16>, vector<8x128xf32> -> vector<8x128xf32>
    %c0_3 = arith.constant 0 : index
    %c0_4 = arith.constant 0 : index
    %4 = vector.load %arg3[%c0_3, %c0_4] : memref<1x128xf32, #tpu.memory_space<vmem>>, vector<1x128xf32>
    %5 = vector.broadcast %4 : vector<1x128xf32> to vector<8x128xf32>
    %6 = arith.addf %3, %5 : vector<8x128xf32>
    %7 = math.tanh %6 : vector<8x128xf32>
    %8 = arith.truncf %7 : vector<8x128xf32> to vector<8x128xbf16>
    %c0_5 = arith.constant 0 : index
    %c0_6 = arith.constant 0 : index
    %9 = vector.load %arg4[%c0_5, %c0_6] : memref<128x128xbf16, #tpu.memory_space<vmem>>, vector<128x128xbf16>
    %cst_7 = arith.constant dense<0.000000e+00> : vector<8x128xf32>
    %10 = tpu.matmul %8, %9, %cst_7 {dimension_numbers = #tpu.dot_dimension_numbers<[1], [0], [0], [1], [0, 0, 1, 1], [], []>} : vector<8x128xbf16>, vector<128x128xbf16>, vector<8x128xf32> -> vector<8x128xf32>
    %c0_8 = arith.constant 0 : index
    %c0_9 = arith.constant 0 : index
    %11 = vector.load %arg5[%c0_8, %c0_9] : memref<1x128xf32, #tpu.memory_space<vmem>>, vector<1x128xf32>
    %12 = vector.broadcast %11 : vector<1x128xf32> to vector<8x128xf32>
    %13 = arith.addf %10, %12 : vector<8x128xf32>
    %14 = math.tanh %13 : vector<8x128xf32>
    %15 = arith.truncf %14 : vector<8x128xf32> to vector<8x128xbf16>
    %16 = arith.extf %15 : vector<8x128xbf16> to vector<8x128xf32>
    %c0_10 = arith.constant 0 : index
    %c0_11 = arith.constant 0 : index
    %17 = vector.load %arg6[%c0_10, %c0_11] : memref<1x128xbf16, #tpu.memory_space<vmem>>, vector<1x128xbf16>
    %18 = arith.extf %17 : vector<1x128xbf16> to vector<1x128xf32>
    %19 = vector.broadcast %18 : vector<1x128xf32> to vector<8x128xf32>
    %20 = arith.mulf %16, %19 : vector<8x128xf32>
    %cst_12 = arith.constant dense<0.000000e+00> : vector<8xf32>
    %21 = vector.multi_reduction <add>, %20, %cst_12 [1] : vector<8x128xf32> to vector<8xf32>
    %22 = vector.shape_cast %21 : vector<8xf32> to vector<8x1xf32>
    %c0_13 = arith.constant 0 : index
    %c0_14 = arith.constant 0 : index
    %23 = vector.load %arg7[%c0_13, %c0_14] : memref<1x1xf32, #tpu.memory_space<vmem>>, vector<1x1xf32>
    %24 = vector.broadcast %23 : vector<1x1xf32> to vector<8x1xf32>
    %25 = arith.addf %22, %24 : vector<8x1xf32>
    %c0_15 = arith.constant 0 : index
    %c0_16 = arith.constant 0 : index
    %26 = vector.load %arg8[%c0_15, %c0_16] : memref<8x1xf32, #tpu.memory_space<vmem>>, vector<8x1xf32>
    tpu.vector_store %arg8[%c0_15, %c0_16], %25 {strides = array<i32>} : memref<8x1xf32, #tpu.memory_space<vmem>>, vector<8x1xf32>,
    return
  }
  func.func @transform_0(%arg0: i32) -> (i32, i32) {
    %c0_i32 = arith.constant 0 : i32
    %c0_i32_0 = arith.constant 0 : i32
    return %arg0, %c0_i32 : i32, i32
  }
  func.func @transform_1(%arg0: i32) -> (i32, i32) {
    %c0_i32 = arith.constant 0 : i32
    %c0_i32_0 = arith.constant 0 : i32
    %c0_i32_1 = arith.constant 0 : i32
    return %c0_i32, %c0_i32_0 : i32, i32
  }
  func.func @transform_2(%arg0: i32) -> (i32, i32) {
    %c0_i32 = arith.constant 0 : i32
    %c0_i32_0 = arith.constant 0 : i32
    %c0_i32_1 = arith.constant 0 : i32
    return %c0_i32, %c0_i32_0 : i32, i32
  }
  func.func @transform_3(%arg0: i32) -> (i32, i32) {
    %c0_i32 = arith.constant 0 : i32
    %c0_i32_0 = arith.constant 0 : i32
    %c0_i32_1 = arith.constant 0 : i32
    return %c0_i32, %c0_i32_0 : i32, i32
  }
  func.func @transform_4(%arg0: i32) -> (i32, i32) {
    %c0_i32 = arith.constant 0 : i32
    %c0_i32_0 = arith.constant 0 : i32
    %c0_i32_1 = arith.constant 0 : i32
    return %c0_i32, %c0_i32_0 : i32, i32
  }
  func.func @transform_5(%arg0: i32) -> (i32, i32) {
    %c0_i32 = arith.constant 0 : i32
    %c0_i32_0 = arith.constant 0 : i32
    %c0_i32_1 = arith.constant 0 : i32
    return %c0_i32, %c0_i32_0 : i32, i32
  }
  func.func @transform_6(%arg0: i32) -> (i32, i32) {
    %c0_i32 = arith.constant 0 : i32
    %c0_i32_0 = arith.constant 0 : i32
    %c0_i32_1 = arith.constant 0 : i32
    return %c0_i32, %c0_i32_0 : i32, i32
  }
  func.func @transform_7(%arg0: i32) -> (i32, i32) {
    %c0_i32 = arith.constant 0 : i32
    %c0_i32_0 = arith.constant 0 : i32
    return %arg0, %c0_i32 : i32, i32
  }
}

</mosaic_0001>

<bundles_post_ra>
// kernel: tpu_custom_call.1
= control target key start
LH: loop header
LB: loop body
LE: loop exit
PB: predicated region body
PF: predicated region fallthrough
CT: control target
= control target key end

     0   :  { %s527_s0 = inlined_call_operand.hbm [shape: f32[8,32], index: 0, kind: input, shape index: {}]   ;;  %s528_s1 = inlined_call_operand.hbm [shape: bf16[32,128], index: 1, kind: input, shape index: {}]   ;;  %s529_s2 = inlined_call_operand.vmem [shape: f32[1,128], index: 2, kind: input, shape index: {}]   ;;  %s530_s3 = inlined_call_operand.hbm [shape: bf16[128,128], index: 3, kind: input, shape index: {}]   ;;  %s531_s4 = inlined_call_operand.vmem [shape: f32[1,128], index: 4, kind: input, shape index: {}]   ;;  %s532_s5 = inlined_call_operand.vmem [shape: bf16[1,128], index: 5, kind: input, shape index: {}]   ;;  %s533_s6 = inlined_call_operand.<no memory space> [shape: f32[1,1], index: 6, kind: input, shape index: {}]   ;;  %s534_s7 = inlined_call_operand.vmem [shape: f32[8,1], index: 7, kind: output, shape index: {}]  }
   0x1   :  { %v12_v0 = vstv %s533_s6 }
   0x2   :  { %13 = vst [vmem:[#allocation2] sm:$0x1] %v12_v0 }
   0x3   :  { %14 = vsyncpa [#allocation4], 0 }
   0x4   :  { %15 = vsyncpa [#allocation6], 0  ;;  %s423_s26 = smov [#allocation5]   ;;  %s353_s30 = scalar_lea.hbm %s528_s1, 256 }
   0x5   :  { %s31_s27 = sshll.u32 %s423_s26, 4  ;;  %p354_p0 = scmp.ne.s32.totalorder %s528_s1, %s353_s30  ;;  %s32_s27 = int_to_ptr.vmem [resolvable:$true] %s31_s27 }
   0x6   :  { %p357_p1 = scmp.lt.u32.totalorder %s353_s30, %s528_s1 }
   0x8   :  { %p359_p2 = pnand %p357_p1, %p354_p0 }
   0xa   :  { %362 = shalt.err (!%p359_p2)
}
   0xb   :  { %s363_s6 = scalar_lea.vmem %s32_s27, 256  ;;  %p368_p4 = scmp.lt.s32.totalorder %s32_s27, %s32_s27 }
   0xc   :  { %p364_p3 = scmp.ne.s32.totalorder %s32_s27, %s363_s6  ;;  %p369_p5 = scmp.lt.s32.totalorder %s363_s6, %s363_s6 }
   0xe   :  { %p370_p6 = por %p369_p5, %p368_p4 }
  0x10   :  { %p371_p7 = pnand %p370_p6, %p364_p3 }
  0x12   :  { %374 = shalt.err (!%p371_p7)
}
  0x13   :  { %s424_s12 = smov 64   ;;  %s425_s13 = smov 4  }
  0x14   :  { %37 = dma.hbm_to_vmem [thread:$0]  %s528_s1, 256, %s32_s27, [#allocation6], %s424_s12, %s424_s12, %s425_s13  }
  0x15   :  { %s426_s16 = smov [#allocation3]   ;;  %s427_s18 = smov [#allocation7]  }
  0x16   :  { %s22_s17 = sshll.u32 %s426_s16, 4  ;;  %s45_s19 = sshll.u32 %s427_s18, 4  ;;  %s23_s17 = int_to_ptr.vmem [resolvable:$true] %s22_s17  ;;  %s46_s19 = int_to_ptr.vmem [resolvable:$true] %s45_s19 }
  0x17   :  { %s375_s22 = scalar_lea.hbm %s527_s0, 128 }
  0x18   :  { %p376_p8 = scmp.ne.s32.totalorder %s527_s0, %s375_s22  ;;  %p379_p9 = scmp.lt.u32.totalorder %s375_s22, %s527_s0 }
  0x1a   :  { %p381_p10 = pnand %p379_p9, %p376_p8 }
  0x1c   :  { %384 = shalt.err (!%p381_p10)
}
  0x1d   :  { %s385_s1 = scalar_lea.vmem %s23_s17, 128  ;;  %p390_p12 = scmp.lt.s32.totalorder %s23_s17, %s23_s17 }
  0x1e   :  { %p386_p11 = scmp.ne.s32.totalorder %s23_s17, %s385_s1  ;;  %p391_p13 = scmp.lt.s32.totalorder %s385_s1, %s385_s1 }
  0x20   :  { %p392_p0 = por %p391_p13, %p390_p12 }
  0x22   :  { %p393_p1 = pnand %p392_p0, %p386_p11 }
  0x24   :  { %396 = shalt.err (!%p393_p1)
}
  0x25   :  { %25 = dma.hbm_to_vmem [thread:$0]  %s527_s0, 128, %s23_s17, [#allocation4]  }
  0x26   :  { %s397_s8 = scalar_lea.hbm %s530_s3, 1024 }
  0x27   :  { %p398_p2 = scmp.ne.s32.totalorder %s530_s3, %s397_s8  ;;  %p401_p3 = scmp.lt.u32.totalorder %s397_s8, %s530_s3 }
  0x29   :  { %p403_p4 = pnand %p401_p3, %p398_p2 }
  0x2b   :  { %406 = shalt.err (!%p403_p4)
}
  0x2c   :  { %s407_s14 = scalar_lea.vmem %s46_s19, 1024  ;;  %p412_p6 = scmp.lt.s32.totalorder %s46_s19, %s46_s19 }
  0x2d   :  { %p408_p5 = scmp.ne.s32.totalorder %s46_s19, %s407_s14  ;;  %p413_p7 = scmp.lt.s32.totalorder %s407_s14, %s407_s14 }
  0x2f   :  { %p414_p8 = por %p413_p7, %p412_p6 }
  0x31   :  { %p415_p9 = pnand %p414_p8, %p408_p5 }
  0x33   :  { %418 = shalt.err (!%p415_p9)
}
  0x34   :  { %51 = dma.hbm_to_vmem [thread:$0]  %s530_s3, 1024, %s46_s19, [#allocation6], %s424_s12, %s424_s12, %s425_s13  }
  0x35   :  { %419 = dma.done.wait [#allocation4], 128  }
  0x36   :  { %420 = vsyncadd [#allocation4], 4294967168 }
  0x37   :  { %421 = dma.done.wait [#allocation6], 1280  }
  0x38   :  { %422 = vsyncadd [#allocation6], 4294966016  ;;  %v428_v1 = vmov 0.0   ;;  %vm429_vm0 = vmmov 0   ;;  %v339_v2 = vld [vmem:[#allocation5] sm:$0xff]   ;;  %v340_v3 = vld [vmem:[#allocation5 + $0x8] sm:$0xff]   ;;  %v255_v27 = vlaneseq }
  0x39   :  { %304 = vmatprep.subr.bf16.mxu0 %v428_v1  ;;  %308 = vmatprep.mubr.msk.bf16.mxu0 %vm429_vm0, %v428_v1  ;;  %v68_v4 = vld [vmem:[#allocation3] sm:$0xff]  ;;  %v341_v5 = vld [vmem:[#allocation7] sm:$0xff]   ;;  %vm93_vm1 = vcmask 261120   ;;  %v343_v8 = vld [vmem:[#allocation7 + $0x10] sm:$0xff]   ;;  %vm270_vm2 = vcmask 7168  }
  0x3a   :  { %312 = vmatprep.subr.bf16.mxu1 %v428_v1  ;;  %328 = vmatprep.mubr.msk.bf16.mxu1 %vm429_vm0, %v428_v1  ;;  %v69_v6 = vpack.c.bf16 %v68_v4, %v68_v4  ;;  %v342_v7 = vld [vmem:[#allocation7 + $0x8] sm:$0xff]   ;;  %v344_v9 = vld [vmem:[#allocation7 + $0x18] sm:$0xff]   ;;  %v345_v10 = vld [vmem:[#allocation7 + $0x20] sm:$0xff]   ;;  %v256_v29 = vshrl.u32 %v255_v27, 7 }
  0x3b   :  { %305 = vmatpush3.bf16.msra.mxu0 %v339_v2  ;;  %313 = vmatpush3.bf16.msra.mxu1 %v341_v5  ;;  %v346_v11 = vld [vmem:[#allocation7 + $0x28] sm:$0xff]   ;;  %v347_v12 = vld [vmem:[#allocation7 + $0x30] sm:$0xff]   ;;  %v348_v13 = vld [vmem:[#allocation7 + $0x38] sm:$0xff]  }
  0x3c   :  { %306 = vmatprep.subr.bf16.mxu0 %v428_v1  ;;  %314 = vmatprep.subr.bf16.mxu1 %v428_v1  ;;  %v278_v14 = vld [vmem:[%s529_s2] ss:$0 sm:$0xff]  ;;  %v257_v32 = vsub.s32 0, %v256_v29 }
  0x3d   :  { %v282_v22 = vld [vmem:[%s531_s4] ss:$0 sm:$0xff] }
  0x3e   :  { %v253_v30 = vld [vmem:[%s532_s5] sm:$0x1] }
  0x3f   :  { %307 = vmatpush3.bf16.msra.mxu0 %v340_v3  ;;  %315 = vmatpush3.bf16.msra.mxu1 %v342_v7  ;;  %v254_v31 = vunpack.c.l.bf16 %v253_v30  ;;  %v291_v38 = vld [vmem:[#allocation2] ss:$0 sm:$0xff] }
  0x40   :  { %316 = vmatprep.subr.bf16.mxu1 %v428_v1 }
  0x41   :  { %v258_v35 = vrot.slane %v254_v31, %v257_v32 }
  0x42   :  { %309 = vmatmul.mubr.msk.bf16.vlgmr.msra.gmra.mrb[0].mxu0 %vm93_vm1, %v69_v6 }
  0x43   :  { %317 = vmatpush3.bf16.msra.mxu1 %v343_v8 }
  0x44   :  { %318 = vmatprep.subr.bf16.mxu1 %v428_v1 }
  0x47   :  { %319 = vmatpush3.bf16.msra.mxu1 %v344_v9 }
  0x48   :  { %320 = vmatprep.subr.bf16.mxu1 %v428_v1 }
  0x4b   :  { %321 = vmatpush3.bf16.msra.mxu1 %v345_v10 }
  0x4c   :  { %322 = vmatprep.subr.bf16.mxu1 %v428_v1 }
  0x4f   :  { %323 = vmatpush3.bf16.msra.mxu1 %v346_v11 }
  0x50   :  { %324 = vmatprep.subr.bf16.mxu1 %v428_v1 }
  0x53   :  { %325 = vmatpush3.bf16.msra.mxu1 %v347_v12 }
  0x54   :  { %326 = vmatprep.subr.bf16.mxu1 %v428_v1 }
  0x57   :  { %327 = vmatpush3.bf16.msra.mxu1 %v348_v13 }
 0x115   :  { %v131_v15 = vpop.f32.mrb[0].mxu0 }
 0x116   :  { %v132_v16 = vadd.f32 %v278_v14, %v131_v15  ;;  %v310_v17 = vpop.f32.mrb[1].mxu0 }
 0x117   :  { %v134_v18 = vpop.f32.mrb[2].mxu0 }
 0x118   :  { %349 = vtanh.f32 %v132_v16  ;;  %v311_v19 = vpop.f32.mrb[3].mxu0 }
 0x122   :  { %v350_v20 = vpop.eup %349 }
 0x123   :  { %v138_v21 = vpack.c.bf16 %v350_v20, %v350_v20 }
 0x125   :  { %329 = vmatmul.mubr.bf16.vlgmr.msra.gmra.mrb[0].mxu1 %v138_v21 }
 0x1f8   :  { %v244_v23 = vpop.f32.mrb[0].mxu1 }
 0x1f9   :  { %v245_v24 = vadd.f32 %v282_v22, %v244_v23  ;;  %v330_v25 = vpop.f32.mrb[1].mxu1 }
 0x1fa   :  { %v247_v26 = vpop.f32.mrb[2].mxu1 }
 0x1fb   :  { %351 = vtanh.f32 %v245_v24  ;;  %v331_v28 = vpop.f32.mrb[3].mxu1 }
 0x205   :  { %v352_v33 = vpop.eup %351 }
 0x206   :  { %v251_v34 = vpack.c.bf16 %v352_v33, %v352_v33 }
 0x208   :  { %v252_v36 = vunpack.c.l.bf16 %v251_v34 }
 0x20a   :  { %v259_v37 = vmul.f32 %v258_v35, %v252_v36 }
 0x20c   :  { %260 = vadd.xlane.f32.xlu0 %v259_v37 }
 0x299   :  { %v261_v39 = vpop.xlane.xlu0 %260 }
 0x29a   :  { %v269_v40 = vadd.f32 %v291_v38, %v261_v39 }
 0x29c   :  { %271 = vst.msk [vmem:[%s534_s7] sm:$0xff] %vm270_vm2, %v269_v40 }
 0x29d   :  { %276 = vsyncpa [#allocation4], 1 }
 0x29e   :  { %277 = vsyncpa [#allocation6], 1 }

</bundles_post_ra>
